<compile_context>
chip_gen: v7x
topology: tpu7x:2x2x1
jax: 0.10.0
libtpu: 0.0.40
codegen_flags: <defaults>
</compile_context>

<pallas_src>
import functools

import jax
import jax.numpy as jnp
from jax import lax
from jax.experimental import pallas as pl
from jax.experimental.pallas import tpu as pltpu


def _cluster_lookup_kernel(alpha_ref, x_ref, cn_ref, probs_ref, loss_ref,
                           *, subtract_max):
    """One (batch, hw-tile) step of the ClusterLookup forward pass.

    alpha_ref : SMEM (1,)        f32  softmax temperature
    x_ref     : VMEM (C, t_hw)   f32  raw feature slab (channels x pixels)
    cn_ref    : VMEM (N, C)      f32  pre-normalized cluster centers
    probs_ref : VMEM (N, t_hw)   f32  softmax cluster probabilities (output)
    loss_ref  : VMEM (1, 128)    f32  per-tile sum of probs*inner at lane 0
    """
    x = x_ref[...]                        # (C, t_hw)
    cn = cn_ref[...]                      # (N, C)
    alpha = alpha_ref[0]

    # MXU first, normalize after: (cn @ x) * inv == cn @ (x * inv), because the
    # per-pixel 1/||x|| is a per-column scalar.  Saves a (C x t_hw) VPU pass.
    raw = jnp.dot(cn, x, preferred_element_type=jnp.float32)      # (N, t_hw)
    sumsq = jnp.sum(x * x, axis=0, keepdims=True)                 # (1, t_hw)
    # F.normalize eps=1e-12:  1/max(||x||,1e-12) == rsqrt(max(sumsq,1e-24))
    inv = lax.rsqrt(jnp.maximum(sumsq, jnp.float32(1e-24)))       # (1, t_hw) EUP

    # softmax(inner * alpha) over the cluster (sublane) axis, with alpha folded
    # into the same per-column broadcast.
    scaled = raw * (alpha * inv)                                  # (N, t_hw)
    if subtract_max:
        scaled = scaled - jnp.max(scaled, axis=0, keepdims=True)
    e = jnp.exp(scaled)
    s = jnp.sum(e, axis=0, keepdims=True)
    probs = e * pl.reciprocal(s)                                  # EUP divide
    probs_ref[...] = probs.astype(probs_ref.dtype)

    # cluster_loss contribution of this tile:
    #   sum_{n,pixels} probs*inner = sum_pixels inv * (sum_n probs*raw)
    per_pixel = jnp.sum(probs * raw, axis=0, keepdims=True) * inv  # (1, t_hw)
    tile_sum = jnp.sum(per_pixel)                                  # scalar (XLU)
    lane = lax.broadcasted_iota(jnp.int32, (1, 128), 1)
    loss_ref[...] = jnp.where(lane == 0, tile_sum, jnp.float32(0.0))


def _pick_tile_hw(hw, c, n, batch, budget_bytes=8 << 20):
    """Largest multiple-of-128 divisor of hw whose f32 working set (double-
    buffered I/O blocks + in-kernel temporaries) fits the budget, capped so the
    grid keeps enough steps for pipelining / megacore sharding."""
    if hw % 128 != 0:
        # Full-extent block: the other shape allowed by the (8,128) rule.
        return hw
    # bytes per lane-column: x + probs I/O (double-buffered) + ~(C + 5N) temps.
    per_col = 4 * (2 * (c + n) + (c + 5 * n))
    vmem_cap = max(128, (budget_bytes // per_col) // 128 * 128)
    # Keep >= ~8 grid steps when the image is large, but never go below 512
    # lanes (lane-dense stores, low per-step overhead).
    steps_cap = max(512, ((hw * batch) // 8) // 128 * 128)
    cap = min(hw, vmem_cap, steps_cap)
    best = 128
    t = 128
    while t <= hw:
        if hw % t == 0 and t <= cap:
            best = t
        t += 128
    return best


def cluster_lookup_forward(x, clusters, alpha, *, tile_hw=None):
    """ClusterLookup.forward(x, alpha) with log_probs=False, is_direct=False.

    x        : (B, C, H, W) float32
    clusters : (N, C)       float32
    alpha    : python float / scalar softmax temperature
    returns  : (cluster_loss scalar, cluster_probs (B, N, H, W))
    """
    # TODO(synk): alpha=None (argmax one-hot), log_probs=True and is_direct=True
    # branches of the torch module are not kernelized; only the softmax path is.
    B, C, H, W = x.shape
    N = clusters.shape[0]
    HW = H * W

    x_flat = x.reshape(B, C, HW).astype(jnp.float32)   # reshape only, no transpose
    clusters = clusters.astype(jnp.float32)

    # Hoist cluster normalization out of the grid (runs once, tiny).
    c_norm = jnp.sqrt(jnp.sum(clusters * clusters, axis=1, keepdims=True))
    cn = clusters / jnp.maximum(c_norm, jnp.float32(1e-12))

    if tile_hw is None:
        tile_hw = _pick_tile_hw(HW, C, N, B)
    assert HW % tile_hw == 0, "tile_hw must divide H*W"
    assert tile_hw == HW or tile_hw % 128 == 0, "tiles must be lane-dense"
    n_tiles = HW // tile_hw

    # Statically skip the softmax max-subtraction when alpha is a bounded
    # Python scalar: |inner| <= 1, so |inner*alpha| <= |alpha| cannot overflow.
    static_alpha = float(alpha) if isinstance(alpha, (int, float)) else None
    subtract_max = not (static_alpha is not None and abs(static_alpha) <= 60.0)

    alpha_arr = jnp.asarray([alpha], dtype=jnp.float32)
    grid = (B, n_tiles)
    kernel = functools.partial(_cluster_lookup_kernel, subtract_max=subtract_max)

    probs, ploss = pl.pallas_call(
        kernel,
        out_shape=(
            jax.ShapeDtypeStruct((B, N, HW), jnp.float32),
            jax.ShapeDtypeStruct((B, 1, n_tiles * 128), jnp.float32),
        ),
        grid=grid,
        in_specs=[
            pl.BlockSpec(memory_space=pltpu.MemorySpace.SMEM),           # alpha
            pl.BlockSpec((None, C, tile_hw), lambda b, j: (b, 0, j)),    # x
            pl.BlockSpec((N, C), lambda b, j: (0, 0)),                   # clusters
        ],
        out_specs=(
            pl.BlockSpec((None, N, tile_hw), lambda b, j: (b, 0, j)),    # probs
            pl.BlockSpec((None, 1, 128), lambda b, j: (b, 0, j)),        # loss
        ),
        compiler_params=pltpu.CompilerParams(
            dimension_semantics=("parallel", "parallel"),
            vmem_limit_bytes=32 << 20,
        ),
    )(alpha_arr, x_flat, cn)

    cluster_loss = -jnp.sum(ploss) / jnp.float32(B * HW)
    cluster_probs = probs.reshape(B, N, H, W)
    return cluster_loss, cluster_probs


if __name__ == "__main__":
    key = jax.random.PRNGKey(0)
    k_x, k_c = jax.random.split(key)

    # small shapes consistent with the module: dim=32 channels, n_classes=16
    B, C, H, W = 2, 32, 16, 16
    N = 16
    alpha = 3.0

    x = jax.random.normal(k_x, (B, C, H, W), dtype=jnp.float32)
    clusters = jax.random.normal(k_c, (N, C), dtype=jnp.float32)

    loss, probs = cluster_lookup_forward(x, clusters, alpha)
    loss, probs = jax.block_until_ready((loss, probs))

    # pure-JAX reference (mirrors the torch forward exactly)
    cn_ref = clusters / jnp.maximum(
        jnp.linalg.norm(clusters, axis=1, keepdims=True), 1e-12)
    xn_ref = x / jnp.maximum(jnp.linalg.norm(x, axis=1, keepdims=True), 1e-12)
    inner = jnp.einsum('bchw,nc->bnhw', xn_ref, cn_ref)
    ref_probs = jax.nn.softmax(inner * alpha, axis=1)
    ref_loss = -(ref_probs * inner).sum(1).mean()

    assert probs.shape == (B, N, H, W)
    assert jnp.allclose(probs, ref_probs, atol=1e-5, rtol=1e-5)
    assert jnp.allclose(loss, ref_loss, atol=1e-5, rtol=1e-5)

    print("KERNEL_OK")
</pallas_src>

<mosaic_0001>
module attributes {stable_mosaic.version = 11 : i64} {
  func.func @_cluster_lookup_kernel(%arg0: i32, %arg1: i32, %arg2: memref<1xf32, #tpu.memory_space<smem>>, %arg3: memref<1x32x256xf32, #tpu.memory_space<vmem>>, %arg4: memref<16x32xf32, #tpu.memory_space<vmem>>, %arg5: memref<1x16x256xf32, #tpu.memory_space<vmem>>, %arg6: memref<1x1x128xf32, #tpu.memory_space<vmem>>) attributes {dimension_semantics = [#tpu.dimension_semantics<parallel>, #tpu.dimension_semantics<parallel>], iteration_bounds = array<i64: 2, 1>, scalar_prefetch = 0 : i64, scratch_operands = 0 : i64, tpu.core_type = #tpu.core_type<tc>, window_params = [{transform_indices = @transform_0, window_bounds = array<i64: 1>}, {transform_indices = @transform_1, window_bounds = array<i64: 1, 32, 256>}, {pipeline_mode = #tpu.pipeline_mode<synchronous>, transform_indices = @transform_2, window_bounds = array<i64: 16, 32>}, {transform_indices = @transform_3, window_bounds = array<i64: 1, 16, 256>}, {transform_indices = @transform_4, window_bounds = array<i64: 1, 1, 128>}]} {
    %c0 = arith.constant 0 : index
    %c0_0 = arith.constant 0 : index
    %c0_1 = arith.constant 0 : index
    %0 = vector.load %arg3[%c0, %c0_0, %c0_1] : memref<1x32x256xf32, #tpu.memory_space<vmem>>, vector<1x32x256xf32>
    %1 = vector.shape_cast %0 : vector<1x32x256xf32> to vector<32x256xf32>
    %c0_2 = arith.constant 0 : index
    %c0_3 = arith.constant 0 : index
    %2 = vector.load %arg4[%c0_2, %c0_3] : memref<16x32xf32, #tpu.memory_space<vmem>>, vector<16x32xf32>
    %c0_4 = arith.constant 0 : index
    %3 = memref.load %arg2[%c0_4] : memref<1xf32, #tpu.memory_space<smem>>
    %cst = arith.constant dense<0.000000e+00> : vector<16x256xf32>
    %4 = tpu.matmul %2, %1, %cst {dimension_numbers = #tpu.dot_dimension_numbers<[1], [0], [0], [1], [0, 0, 1, 1], [], []>} : vector<16x32xf32>, vector<32x256xf32>, vector<16x256xf32> -> vector<16x256xf32>
    %5 = arith.mulf %1, %1 : vector<32x256xf32>
    %cst_5 = arith.constant dense<0.000000e+00> : vector<256xf32>
    %6 = vector.multi_reduction <add>, %5, %cst_5 [0] : vector<32x256xf32> to vector<256xf32>
    %7 = vector.shape_cast %6 : vector<256xf32> to vector<1x256xf32>
    %cst_6 = arith.constant 1.000000e-24 : f32
    %8 = vector.broadcast %cst_6 : f32 to vector<1x256xf32>
    %9 = arith.maximumf %7, %8 : vector<1x256xf32>
    %10 = math.rsqrt %9 : vector<1x256xf32>
    %11 = vector.broadcast %3 : f32 to vector<1x256xf32>
    %12 = arith.mulf %11, %10 : vector<1x256xf32>
    %13 = vector.broadcast %12 : vector<1x256xf32> to vector<16x256xf32>
    %14 = arith.mulf %4, %13 : vector<16x256xf32>
    %15 = math.exp %14 : vector<16x256xf32>
    %cst_7 = arith.constant dense<0.000000e+00> : vector<256xf32>
    %16 = vector.multi_reduction <add>, %15, %cst_7 [0] : vector<16x256xf32> to vector<256xf32>
    %17 = vector.shape_cast %16 : vector<256xf32> to vector<1x256xf32>
    %18 = tpu.reciprocal %17 : vector<1x256xf32> -> vector<1x256xf32>
    %19 = vector.broadcast %18 : vector<1x256xf32> to vector<16x256xf32>
    %20 = arith.mulf %15, %19 : vector<16x256xf32>
    %c0_8 = arith.constant 0 : index
    %c0_9 = arith.constant 0 : index
    %c0_10 = arith.constant 0 : index
    %21 = vector.load %arg5[%c0_8, %c0_9, %c0_10] : memref<1x16x256xf32, #tpu.memory_space<vmem>>, vector<1x16x256xf32>
    %22 = vector.shape_cast %21 : vector<1x16x256xf32> to vector<16x256xf32>
    %23 = vector.shape_cast %20 : vector<16x256xf32> to vector<1x16x256xf32>
    tpu.vector_store %arg5[%c0_8, %c0_9, %c0_10], %23 {strides = array<i32>} : memref<1x16x256xf32, #tpu.memory_space<vmem>>, vector<1x16x256xf32>,
    %24 = arith.mulf %20, %4 : vector<16x256xf32>
    %cst_11 = arith.constant dense<0.000000e+00> : vector<256xf32>
    %25 = vector.multi_reduction <add>, %24, %cst_11 [0] : vector<16x256xf32> to vector<256xf32>
    %26 = vector.shape_cast %25 : vector<256xf32> to vector<1x256xf32>
    %27 = arith.mulf %26, %10 : vector<1x256xf32>
    %28 = vector.shape_cast %27 : vector<1x256xf32> to vector<1x1x256xf32>
    %cst_12 = arith.constant dense<0.000000e+00> : vector<1xf32>
    %29 = vector.multi_reduction <add>, %28, %cst_12 [1, 2] : vector<1x1x256xf32> to vector<1xf32>
    %30 = vector.shape_cast %29 : vector<1xf32> to vector<1x1x1xf32>
    %31 = vector.extract %30[0, 0, 0] : f32 from vector<1x1x1xf32>
    %32 = tpu.iota {dimensions = array<i32: 1>} : vector<1x128xi32>
    %c0_i32 = arith.constant 0 : i32
    %33 = vector.broadcast %c0_i32 : i32 to vector<1x128xi32>
    %34 = arith.cmpi eq, %32, %33 : vector<1x128xi32>
    %cst_13 = arith.constant 0.000000e+00 : f32
    %35 = vector.broadcast %31 : f32 to vector<1x128xf32>
    %36 = vector.broadcast %cst_13 : f32 to vector<1x128xf32>
    %37 = arith.select %34, %35, %36 : vector<1x128xi1>, vector<1x128xf32>
    %c0_14 = arith.constant 0 : index
    %c0_15 = arith.constant 0 : index
    %c0_16 = arith.constant 0 : index
    %38 = vector.load %arg6[%c0_14, %c0_15, %c0_16] : memref<1x1x128xf32, #tpu.memory_space<vmem>>, vector<1x1x128xf32>
    %39 = vector.shape_cast %38 : vector<1x1x128xf32> to vector<1x128xf32>
    %40 = vector.shape_cast %37 : vector<1x128xf32> to vector<1x1x128xf32>
    tpu.vector_store %arg6[%c0_14, %c0_15, %c0_16], %40 {strides = array<i32>} : memref<1x1x128xf32, #tpu.memory_space<vmem>>, vector<1x1x128xf32>,
    return
  }
  func.func @transform_0(%arg0: i32, %arg1: i32) -> i32 {
    %c0_i32 = arith.constant 0 : i32
    %c0_i32_0 = arith.constant 0 : i32
    return %c0_i32 : i32
  }
  func.func @transform_1(%arg0: i32, %arg1: i32) -> (i32, i32, i32) {
    %c0_i32 = arith.constant 0 : i32
    %c0_i32_0 = arith.constant 0 : i32
    return %arg0, %c0_i32, %arg1 : i32, i32, i32
  }
  func.func @transform_2(%arg0: i32, %arg1: i32) -> (i32, i32) {
    %c0_i32 = arith.constant 0 : i32
    %c0_i32_0 = arith.constant 0 : i32
    %c0_i32_1 = arith.constant 0 : i32
    return %c0_i32, %c0_i32_0 : i32, i32
  }
  func.func @transform_3(%arg0: i32, %arg1: i32) -> (i32, i32, i32) {
    %c0_i32 = arith.constant 0 : i32
    %c0_i32_0 = arith.constant 0 : i32
    return %arg0, %c0_i32, %arg1 : i32, i32, i32
  }
  func.func @transform_4(%arg0: i32, %arg1: i32) -> (i32, i32, i32) {
    %c0_i32 = arith.constant 0 : i32
    %c0_i32_0 = arith.constant 0 : i32
    return %arg0, %c0_i32, %arg1 : i32, i32, i32
  }
}

</mosaic_0001>

<bundles_post_ra>
// kernel: tpu_custom_call.1
= control target key start
LH: loop header
LB: loop body
LE: loop exit
PB: predicated region body
PF: predicated region fallthrough
CT: control target
= control target key end

     0   :  { %s1247_s0 = inlined_call_operand.<no memory space> [shape: f32[1], index: 0, kind: input, shape index: {}]   ;;  %s1248_s1 = inlined_call_operand.hbm [shape: f32[2,32,256], index: 1, kind: input, shape index: {}]   ;;  %s1249_s2 = inlined_call_operand.hbm [shape: f32[16,32], index: 2, kind: input, shape index: {}]   ;;  %s1250_s3 = inlined_call_operand.hbm [shape: f32[2,16,256], index: 3, kind: output, shape index: {0}]   ;;  %s1251_s4 = inlined_call_operand.hbm [shape: f32[2,1,128], index: 4, kind: output, shape index: {1}]  }
   0x1   :  { %10 = sst [smem:[#allocation2]] %s1247_s0 }
   0x2   :  { %11 = vsyncpa [#allocation4], 0 }
   0x3   :  { %13 = vsyncpa [#allocation4 + $0x1], 0 }
   0x4   :  { %14 = vsyncpa [#allocation7], 0 }
   0x5   :  { %15 = vsyncpa [#allocation5], 0 }
   0x6   :  { %17 = vsyncpa [#allocation5 + $0x1], 0 }
   0x7   :  { %18 = vsyncpa [#allocation10], 0 }
   0x8   :  { %20 = vsyncpa [#allocation10 + $0x1], 0  ;;  %s981_s17 = smov 0   ;;  %s983_s18 = smov 0  }
   0x9   :  { %s985_s19 = smov 0   ;;  %s987_s20 = smov 0  }
   0xa   :  { %s989_s21 = smov 0   ;;  %s991_s22 = smov 0  }
   0xb LB: > { %s627_s0 = sadd.s32 4294967295, %s940_s22   ;;  %s628_s23 = sadd.s32 4294967294, %s940_s22   ;;  %s940_s22 = sphi %s991_s22, %s26_s22   ;;  %s936_s21 = sphi %s989_s21, %s1275_s21   ;;  %s932_s20 = sphi %s987_s20, %s1274_s20   ;;  %s928_s19 = sphi %s985_s19, %s1273_s19   ;;  %s924_s18 = sphi %s983_s18, %s1272_s18   ;;  %s920_s17 = sphi %s981_s17, %s1271_s17  }
   0xc   : > { %p81_p0 = scmp.ne.s32.totalorder %s924_s18, %s920_s17  ;;  %p1015_p1 = scmp.eq.s32.totalorder %s627_s0, 0 }
   0xd   : > { %p1019_p2 = scmp.eq.s32.totalorder %s627_s0, 1  ;;  %p134_p3 = scmp.eq.s32.totalorder %s628_s23, 1 }
   0xe   : > { %s1256_s24 = scalar_select %p1015_p1, 1, 0 }
   0xf   : > { %s1257_s25 = scalar_select %p1019_p2, 1, 0 }
  0x10   : > { %p1025_p4 = por %p1015_p1, %p81_p0  ;;  %p629_p5 = scmp.ge.s32.totalorder %s940_s22, 1 }
  0x11   : > { %p1030_p6 = por %p134_p3, %p81_p0  ;;  %p169_p7 = scmp.lt.s32.totalorder %s940_s22, 3 }
  0x12   : > { %s1258_s26 = scalar_select %p1025_p4, 1, 0 }
  0x13   : > { %s1259_s27 = scalar_select %p1030_p6, 1, 0 }
  0x14   : > { %p1035_p8 = pnand %p629_p5, %p169_p7  ;;  %s942_s29 = smov [#allocation6]  }
  0x15   : > { %s184_s30 = sshll.u32 %s942_s29, 4  ;;  %s38_s6 = sadd.s32 1, %s936_s21  ;;  %s185_s30 = int_to_ptr.vmem [resolvable:$true] %s184_s30 }
  0x16   : > { %s1260_s28 = scalar_select %p1035_p8, 1, 0 }
  0x17   : > { %p673_p9 = pneg %p1035_p8  ;;  %s764_s9 = scalar_lea.hbm %s1249_s2, 256 }
  0x18   : > { %p765_p12 = scmp.ne.s32.totalorder %s1249_s2, %s764_s9  ;;  %p771_p5 = scmp.lt.u32.totalorder %s764_s9, %s1249_s2 }
  0x19   : > { %p1044_p11 = pnand %p673_p9, %p1015_p1 }
  0x1b   : > { %p766_p13 = pneg %p1044_p11 }
  0x1d   : > { %p767_p0 = pnand %p766_p13, %p765_p12 }
  0x1f   : > { %p768_p3 = pneg %p767_p0 }
  0x21   : > { %p773_p7 = pnand %p771_p5, %p768_p3 }
  0x23   : > { %776 = shalt.err (!%p773_p7)
}
  0x24   : > { %s777_s14 = scalar_lea.vmem %s185_s30, 256  ;;  %p785_p1 = scmp.lt.s32.totalorder %s185_s30, %s185_s30 }
  0x25   : > { %p778_p9 = scmp.ne.s32.totalorder %s185_s30, %s777_s14  ;;  %p786_p4 = scmp.lt.s32.totalorder %s777_s14, %s777_s14 }
  0x27   : > { %p780_p10 = pnand %p778_p9, %p766_p13  ;;  %p787_p8 = por %p786_p4, %p785_p1 }
  0x29   : > { %p781_p6 = pneg %p780_p10 }
  0x2b   : > { %p788_p2 = pnand %p787_p8, %p781_p6 }
  0x2d   : > { %791 = shalt.err (!%p788_p2)
}
  0x2e   : > { %s943_s15 = smov 128   ;;  %s944_s16 = smov 8  }
  0x2f   : > { %676 = dma.hbm_to_vmem [thread:$0]  (!%p1044_p11), %s1249_s2, 256, %s185_s30, [#allocation7], %s943_s15, %s943_s15, %s944_s16  }
  0x30   : > { %p40_p1 = scmp.ge.s32.totalorder %s38_s6, 2  ;;  %s68_s29 = sadd.s32 1, %s928_s19 }
  0x31   : > { %p75_p2 = scmp.ne.s32.totalorder %s928_s19, %s924_s18  ;;  %p76_p4 = scmp.eq.s32.totalorder %s940_s22, 0 }
  0x32   : > { %s1277_s6 = smov (%p40_p1, %s38_s6), 0  ;;  %p1263_p8 = scmp.ne.s32.totalorder %s1257_s25, 0 }
  0x33   : > { %p1071_p6 = por %p76_p4, %p75_p2  ;;  %s63_s5 = ssub.s32 %s936_s21, %s1277_s6 }
  0x34   : > { %p1077_p10 = por %p1263_p8, %p75_p2  ;;  %p689_p12 = scmp.lt.s32.totalorder %s940_s22, 2 }
  0x35   : > { %p66_p11 = scmp.eq.s32.totalorder %s63_s5, 0  ;;  %s198_s30 = sand.u32 1, %s928_s19  }
  0x36   : > { %s632_s9 = sshll.u32 %s198_s30, 6  ;;  %s647_s11 = sshll.u32 %s936_s21, 10 }
  0x37   : > { %s1086_s10 = scalar_select %p66_p11, %s928_s19, %s68_s29  }
  0x38   : > { %s1092_s14 = scalar_lea.hbm %s1248_s1, %s647_s11  ;;  %s202_s25 = scalar_lea.vmem [#allocation3], %s632_s9 }
  0x39   : > { %s211_s15 = sshll.u32 %s202_s25, 4  ;;  %p1098_p13 = pnand %p689_p12, %p1071_p6  ;;  %s1094_s15 = int_to_ptr.vmem [resolvable:$true] %s211_s15 }
  0x3a   : > { %s1102_s0 = scalar_lea.sflag [#allocation4], %s198_s30  ;;  %s792_s23 = scalar_lea.hbm %s1092_s14, 1024 }
  0x3b   : > { %p793_p0 = scmp.ne.s32.totalorder %s1092_s14, %s792_s23  ;;  %p794_p3 = pneg %p1098_p13 }
  0x3c   : > { %s797_s7 = scalar_lea.hbm %s1248_s1, 2048  ;;  %p798_p9 = scmp.lt.u32.totalorder %s1092_s14, %s1248_s1 }
  0x3d   : > { %p795_p5 = pnand %p794_p3, %p793_p0  ;;  %p799_p1 = scmp.lt.u32.totalorder %s797_s7, %s792_s23 }
  0x3e   : > { %p801_p4 = scmp.lt.u32.totalorder %s792_s23, %s1092_s14 }
  0x3f   : > { %p796_p7 = pneg %p795_p5  ;;  %p800_p2 = por %p799_p1, %p798_p9 }
  0x41   : > { %p802_p6 = por %p801_p4, %p800_p2 }
  0x43   : > { %p803_p8 = pnand %p802_p6, %p796_p7 }
  0x45   : > { %806 = shalt.err (!%p803_p8)
}
  0x46   : > { %s807_s30 = scalar_lea.vmem %s1094_s15, 1024  ;;  %s945_s12 = smov [#allocation3]  }
  0x47   : > { %p808_p12 = scmp.ne.s32.totalorder %s1094_s15, %s807_s30  ;;  %s812_s13 = sshll.u32 %s945_s12, 4  ;;  %s813_s13 = int_to_ptr.vmem [resolvable:$false] %s812_s13 }
  0x48   : > { %s814_s25 = scalar_lea.vmem %s813_s13, 2048  ;;  %p815_p5 = scmp.lt.s32.totalorder %s1094_s15, %s813_s13 }
  0x49   : > { %p810_p11 = pnand %p808_p12, %p794_p3  ;;  %p816_p9 = scmp.lt.s32.totalorder %s814_s25, %s807_s30 }
  0x4b   : > { %p811_p0 = pneg %p810_p11  ;;  %p817_p1 = por %p816_p9, %p815_p5 }
  0x4d   : > { %p818_p2 = pnand %p817_p1, %p811_p0 }
  0x4f   : > { %821 = shalt.err (!%p818_p2)
}
  0x50   : > { %s946_s23 = smov 256   ;;  %s947_s29 = smov 16  }
  0x51   : > { %680 = dma.hbm_to_vmem [thread:$0]  (!%p1098_p13), %s1092_s14, 1024, %s1094_s15, %s1102_s0, %s946_s23, %s946_s23, %s947_s29  }
  0x52   : > { %p1266_p3 = scmp.ne.s32.totalorder %s1260_s28, 0 }
  0x53   : > { %s1133_s5 = sand.u32 (!%p1266_p3), 1, %s924_s18   ;;  %p1267_p7 = scmp.ne.s32.totalorder (!%p1266_p3), %s1258_s26, 0 }
  0x54   : > { %223 = sbr.rel (%p1266_p3) target bundleno = 605 (0x25d), region = 32  ;;  %s636_s7 = sshll.u32 (!%p1266_p3), %s1133_s5, 6 }
  0x55   : > { %s226_s9 = scalar_lea.sflag (!%p1266_p3), [#allocation4], %s1133_s5  ;;  %s229_s11 = scalar_lea.vmem (!%p1266_p3), [#allocation3], %s636_s7 }
  0x5b   : > { %903 = dma.done.wait (%p1267_p7), %s226_s9, 1024  }
  0x5c   : > { %905 = vsyncadd (%p1267_p7), %s226_s9, 4294966272  ;;  %p1268_p4 = scmp.ne.s32.totalorder %s1256_s24, 0 }
  0x5e   : > { %907 = dma.done.wait (%p1268_p4), [#allocation7], 256  }
  0x5f   : > { %909 = vsyncadd (%p1268_p4), [#allocation7], 4294967040  ;;  %v948_v0 = vmov 0.0   ;;  %v265_v1 = vld [vmem:[%s229_s11 + $0x8] sm:$0xff]  ;;  %v267_v2 = vld [vmem:[%s229_s11 + $0x18] sm:$0xff]  ;;  %vm275_vm0 = vcmask 261120  }
  0x60   : > { %346 = vmatprep.mubr.f32.mxu0 %v948_v0  ;;  %352 = vmatprep.mubr.f32.mxu1 %v948_v0  ;;  %v264_v3 = vld [vmem:[%s229_s11] sm:$0xff]  ;;  %v649_v4 = vpack.c.bf16 %v267_v2, %v265_v1  ;;  %v360_v5 = vmul.f32 %v265_v1, %v265_v1  ;;  %v362_v6 = vmul.f32 %v267_v2, %v267_v2  ;;  %v266_v7 = vld [vmem:[%s229_s11 + $0x10] sm:$0xff]  ;;  %v269_v9 = vld [vmem:[%s229_s11 + $0x28] sm:$0xff]  ;;  %s274_s24 = sld [smem:[#allocation2]]  ;;  %s638_s26 = sshll.u32 %s1133_s5, 5  ;;  %vm448_vm1 = vcmask 1040384  }
  0x61   : > { %v359_v8 = vmul.f32 %v264_v3, %v264_v3  ;;  %v271_v10 = vld [vmem:[%s229_s11 + $0x38] sm:$0xff]  ;;  %v651_v11 = vpack.c.bf16 %v266_v7, %v264_v3  ;;  %v361_v12 = vmul.f32 %v266_v7, %v266_v7  ;;  %v364_v14 = vmul.f32 %v269_v9, %v269_v9  ;;  %v268_v15 = vld [vmem:[%s229_s11 + $0x20] sm:$0xff]  ;;  %v270_v16 = vld [vmem:[%s229_s11 + $0x30] sm:$0xff]  ;;  %s1152_s28 = scalar_lea.vmem [#allocation8], %s638_s26  ;;  %s648_s15 = sshll.u32 %s932_s20, 9 }
  0x62   : > { %v653_v13 = vpack.c.bf16 %v271_v10, %v269_v9  ;;  %650 = vmatprep.subr.bf16.mxu0 %v649_v4  ;;  %v376_v17 = vadd.f32 %v362_v6, %v360_v5  ;;  %657 = vmatprep.subr.bf16.mxu1 %v649_v4  ;;  %v366_v18 = vmul.f32 %v271_v10, %v271_v10  ;;  %v272_v27 = vld [vmem:[#allocation6] sm:$0xff]  ;;  %v273_v28 = vld [vmem:[#allocation6 + $0x8] sm:$0xff]  ;;  %s487_s14 = sshll.u32 %s1152_s28, 4  ;;  %s1167_s30 = scalar_lea.hbm %s1250_s3, %s648_s15  ;;  %s1161_s14 = int_to_ptr.vmem [resolvable:$true] %s487_s14 }
  0x63   : > { %v655_v19 = vpack.c.bf16 %v270_v16, %v268_v15  ;;  %652 = vmatpush1.bf16.msra.mxu0 %v651_v11  ;;  %v367_v20 = vadd.f32 %v361_v12, %v359_v8  ;;  %659 = vmatpush1.bf16.msra.mxu1 %v651_v11  ;;  %v363_v21 = vmul.f32 %v268_v15, %v268_v15  ;;  %s468_s12 = scalar_lea.sflag [#allocation5], %s1133_s5  ;;  %s822_s13 = scalar_lea.vmem %s1161_s14, 512 }
  0x64   : > { %v365_v22 = vmul.f32 %v270_v16, %v270_v16  ;;  %654 = vmatprep.subr.bf16.mxu0 %v653_v13  ;;  %v377_v23 = vadd.f32 %v376_v17, %v364_v14  ;;  %658 = vmatprep.subr.bf16.mxu1 %v653_v13  ;;  %p823_p13 = scmp.ne.s32.totalorder %s1161_s14, %s822_s13  ;;  %s949_s25 = smov [#allocation8]  }
  0x65   : > { %v368_v24 = vadd.f32 %v367_v20, %v363_v21  ;;  %s826_s23 = sshll.u32 %s949_s25, 4  ;;  %s827_s23 = int_to_ptr.vmem [resolvable:$false] %s826_s23 }
  0x66   : > { %v378_v25 = vadd.f32 %v377_v23, %v366_v18  ;;  %v389_v44 = vstv %s274_s24  ;;  %p824_p6 = pnand %p823_p13, %p1077_p10  ;;  %s828_s29 = scalar_lea.vmem %s827_s23, 1024 }
  0x67   : > { %656 = vmatpush1.bf16.msra.mxu0 %v655_v19  ;;  %v369_v26 = vadd.f32 %v368_v24, %v365_v22  ;;  %660 = vmatpush1.bf16.msra.mxu1 %v655_v19  ;;  %p829_p12 = scmp.lt.s32.totalorder %s1161_s14, %s827_s23  ;;  %p830_p11 = scmp.lt.s32.totalorder %s828_s29, %s822_s13 }
  0x68   : > { %v379_v30 = vrot.slane %v378_v25, 4  ;;  %p825_p8 = pneg %p824_p6 }
  0x69   : > { %v370_v29 = vrot.slane %v369_v26, 4  ;;  %p831_p0 = por %p830_p11, %p829_p12 }
  0x6a   : > { %639 = vmatmul.mubr.msk.f32.vlgmr.msra.gmra.mrb[0].mxu0 %vm275_vm0, %v272_v27  ;;  %640 = vmatmul.mubr.msk.f32.vlgmr.msra.gmra.mrb[0].mxu1 %vm275_vm0, %v273_v28  ;;  %v380_v32 = vadd.f32 %v379_v30, %v378_v25 }
  0x6b   : > { %v371_v31 = vadd.f32 %v370_v29, %v369_v26  ;;  %p832_p5 = pnand %p831_p0, %p825_p8 }
  0x6c   : > { %v381_v34 = vrot.slane %v380_v32, 2 }
  0x6d   : > { %v372_v33 = vrot.slane %v371_v31, 2 }
  0x6e   : > { %v382_v36 = vadd.f32 %v381_v34, %v380_v32 }
  0x6f   : > { %v373_v35 = vadd.f32 %v372_v33, %v371_v31 }
  0x70   : > { %v383_v38 = vrot.slane %v382_v36, 1 }
  0x71   : > { %v374_v37 = vrot.slane %v373_v35, 1 }
  0x72   : > { %v384_v40 = vadd.f32 %v383_v38, %v382_v36 }
  0x73   : > { %v375_v39 = vadd.f32 %v374_v37, %v373_v35 }
  0x74   : > { %v386_v42 = vmax.f32 %v384_v40, 1e-24 }
  0x75   : > { %v385_v41 = vmax.f32 %v375_v39, 1e-24 }
  0x77   : > { %748 = vrsqrt.f32 %v385_v41 }
  0x78   : > { %750 = vrsqrt.f32 %v386_v42 }
  0x81   : > { %v1145_v43 = vpop.eup %748 }
  0x82   : > { %v1147_v45 = vpop.eup %750  ;;  %v390_v46 = vmul.f32 %v1145_v43, %v389_v44 }
  0x83   : > { %v391_v47 = vmul.f32 %v1147_v45, %v389_v44 }
 0x13d   : > { %v348_v48 = vpop.f32.mrb[0].mxu0  ;;  %v354_v49 = vpop.f32.mrb[0].mxu1 }
 0x13e   : > { %v392_v50 = vmul.f32 %v390_v46, %v348_v48  ;;  %v394_v51 = vmul.f32 %v390_v46, %v354_v49  ;;  %v350_v52 = vpop.f32.mrb[1].mxu0  ;;  %v356_v53 = vpop.f32.mrb[1].mxu1 }
 0x13f   : > { %v393_v54 = vmul.f32 %v391_v47, %v350_v52  ;;  %v395_v55 = vmul.f32 %v391_v47, %v356_v53 }
 0x140   : > { %v396_v56 = vmul.f32 1.442695, %v392_v50  ;;  %v400_v57 = vmul.f32 1.442695, %v394_v51 }
 0x141   : > { %v398_v58 = vmul.f32 1.442695, %v393_v54  ;;  %v402_v59 = vmul.f32 1.442695, %v395_v55 }
 0x142   : > { %752 = vpow2.f32 %v396_v56 }
 0x143   : > { %754 = vpow2.f32 %v400_v57 }
 0x144   : > { %756 = vpow2.f32 %v398_v58 }
 0x145   : > { %758 = vpow2.f32 %v402_v59 }
 0x14c   : > { %v753_v60 = vpop.eup %752 }
 0x14d   : > { %v755_v61 = vpop.eup %754 }
 0x14e   : > { %v757_v62 = vpop.eup %756  ;;  %v404_v63 = vadd.f32 %v755_v61, %v753_v60 }
 0x14f   : > { %v759_v0 = vpop.eup %758 }
 0x150   : > { %v405_v1 = vrot.slane %v404_v63, 4  ;;  %v411_v2 = vadd.f32 %v759_v0, %v757_v62 }
 0x152   : > { %v406_v3 = vadd.f32 %v405_v1, %v404_v63  ;;  %v412_v4 = vrot.slane %v411_v2, 4 }
 0x154   : > { %v407_v5 = vrot.slane %v406_v3, 2  ;;  %v413_v6 = vadd.f32 %v412_v4, %v411_v2 }
 0x156   : > { %v408_v7 = vadd.f32 %v407_v5, %v406_v3  ;;  %v414_v8 = vrot.slane %v413_v6, 2 }
 0x158   : > { %v409_v9 = vrot.slane %v408_v7, 1  ;;  %v415_v10 = vadd.f32 %v414_v8, %v413_v6 }
 0x15a   : > { %v410_v11 = vadd.f32 %v409_v9, %v408_v7  ;;  %v416_v12 = vrot.slane %v415_v10, 1 }
 0x15c   : > { %760 = vrcp.f32 %v410_v11  ;;  %v417_v13 = vadd.f32 %v416_v12, %v415_v10 }
 0x15e   : > { %762 = vrcp.f32 %v417_v13 }
 0x166   : > { %v761_v14 = vpop.eup %760 }
 0x167   : > { %v420_v15 = vmul.f32 %v761_v14, %v753_v60  ;;  %v422_v16 = vmul.f32 %v761_v14, %v755_v61 }
 0x168   : > { %v763_v17 = vpop.eup %762 }
 0x169   : > { %424 = vst [vmem:[%s1152_s28] sm:$0xff] %v420_v15  ;;  %426 = vst [vmem:[%s1152_s28 + $0x10] sm:$0xff] %v422_v16  ;;  %v428_v18 = vmul.f32 %v420_v15, %v348_v48  ;;  %v430_v19 = vmul.f32 %v422_v16, %v354_v49  ;;  %v421_v20 = vmul.f32 %v763_v17, %v757_v62 }
 0x16a   : > { %v423_v21 = vmul.f32 %v763_v17, %v759_v0 }
 0x16b   : > { %v432_v22 = vadd.f32 %v430_v19, %v428_v18  ;;  %425 = vst [vmem:[%s1152_s28 + $0x8] sm:$0xff] %v421_v20  ;;  %v429_v23 = vmul.f32 %v421_v20, %v350_v52 }
 0x16c   : > { %427 = vst [vmem:[%s1152_s28 + $0x18] sm:$0xff] %v423_v21  ;;  %v431_v24 = vmul.f32 %v423_v21, %v356_v53 }
 0x16d   : > { %v433_v25 = vrot.slane %v432_v22, 4 }
 0x16e   : > { %v439_v26 = vadd.f32 %v431_v24, %v429_v23 }
 0x16f   : > { %v434_v27 = vadd.f32 %v433_v25, %v432_v22 }
 0x170   : > { %v440_v28 = vrot.slane %v439_v26, 4 }
 0x171   : > { %v435_v29 = vrot.slane %v434_v27, 2 }
 0x172   : > { %v441_v30 = vadd.f32 %v440_v28, %v439_v26 }
 0x173   : > { %v436_v32 = vadd.f32 %v435_v29, %v434_v27 }
 0x174   : > { %v442_v31 = vrot.slane %v441_v30, 2 }
 0x175   : > { %v437_v34 = vrot.slane %v436_v32, 1 }
 0x176   : > { %v443_v33 = vadd.f32 %v442_v31, %v441_v30 }
 0x177   : > { %v438_v35 = vadd.f32 %v437_v34, %v436_v32 }
 0x178   : > { %v444_v36 = vrot.slane %v443_v33, 1 }
 0x179   : > { %v446_v38 = vmul.f32 %v1145_v43, %v438_v35 }
 0x17a   : > { %v445_v37 = vadd.f32 %v444_v36, %v443_v33 }
 0x17b   : > { %v449_v40 = vsel %vm448_vm1, %v446_v38, 0.0 }
 0x17c   : > { %v447_v39 = vmul.f32 %v1147_v45, %v445_v37 }
 0x17e   : > { %v450_v41 = vsel %vm448_vm1, %v447_v39, 0.0 }
 0x17f   : > { %v451_v42 = vadd.f32 %v450_v41, %v449_v40 }
 0x181   : > { %452 = vadd.xlane.f32.xlu0 %v451_v42 }
 0x182   : > { %835 = shalt.err (!%p832_p5)
}
 0x183   : > { %s836_s7 = scalar_lea.hbm %s1167_s30, 512  ;;  %s840_s24 = scalar_lea.hbm %s1250_s3, 1024 }
 0x184   : > { %p837_p9 = scmp.ne.s32.totalorder %s1167_s30, %s836_s7  ;;  %p841_p3 = scmp.lt.u32.totalorder %s1167_s30, %s1250_s3 }
 0x185   : > { %p842_p7 = scmp.lt.u32.totalorder %s840_s24, %s836_s7  ;;  %p844_p13 = scmp.lt.u32.totalorder %s836_s7, %s1167_s30 }
 0x186   : > { %p838_p1 = pnand %p837_p9, %p1077_p10 }
 0x187   : > { %p843_p4 = por %p842_p7, %p841_p3 }
 0x188   : > { %p839_p2 = pneg %p838_p1 }
 0x189   : > { %p845_p6 = por %p844_p13, %p843_p4 }
 0x18b   : > { %p846_p8 = pnand %p845_p6, %p839_p2 }
 0x18d   : > { %849 = shalt.err (!%p846_p8)
}
 0x18e   : > { %s950_s15 = smov 256   ;;  %s951_s16 = smov 16   ;;  %v461_v50 = vlaneseq }
 0x18f   : > { %669 = dma.vmem_to_hbm [thread:$0]  (%p1077_p10), %s1161_s14, 512, %s1167_s30, %s468_s12, %s950_s15, %s950_s15, %s951_s16  }
 0x190   : > { %v462_v51 = vand.u32 127, %v461_v50  ;;  %s644_s0 = sshll.u32 %s932_s20, 4  ;;  %s261_s13 = scalar_lea.vmem [#allocation9], %s1133_s5 }
 0x191   : > { %s504_s25 = sshll.u32 %s261_s13, 4  ;;  %s1198_s30 = scalar_lea.hbm %s1251_s4, %s644_s0  ;;  %s1200_s25 = int_to_ptr.vmem [resolvable:$true] %s504_s25 }
 0x192   : > { %vm463_vm2 = vcmp.eq.s32.totalorder %v462_v51, 0  ;;  %s473_s12 = scalar_lea.sflag [#allocation10], %s1133_s5  ;;  %s850_s7 = scalar_lea.vmem %s1200_s25, 16 }
 0x193   : > { %p851_p12 = scmp.ne.s32.totalorder %s1200_s25, %s850_s7  ;;  %s952_s20 = smov [#allocation9]  }
 0x194   : > { %s854_s9 = sshll.u32 %s952_s20, 4  ;;  %s855_s9 = int_to_ptr.vmem [resolvable:$false] %s854_s9 }
 0x195   : > { %p852_p11 = pnand %p851_p12, %p1077_p10  ;;  %s856_s11 = scalar_lea.vmem %s855_s9, 32 }
 0x196   : > { %p857_p5 = scmp.lt.s32.totalorder %s1200_s25, %s855_s9  ;;  %p858_p9 = scmp.lt.s32.totalorder %s856_s11, %s850_s7 }
 0x197   : > { %p853_p0 = pneg %p852_p11 }
 0x198   : > { %p859_p1 = por %p858_p9, %p857_p5 }
 0x19a   : > { %p860_p2 = pnand %p859_p1, %p853_p0 }
 0x20e   : > { %v453_v43 = vpop.xlane.xlu0 %452 }
 0x20f   : > { %v454_v44 = vrot.slane %v453_v43, 4 }
 0x211   : > { %v455_v45 = vadd.f32 %v454_v44, %v453_v43 }
 0x213   : > { %v456_v46 = vrot.slane %v455_v45, 2 }
 0x215   : > { %v457_v47 = vadd.f32 %v456_v46, %v455_v45 }
 0x217   : > { %v458_v48 = vrot.slane %v457_v47, 1 }
 0x219   : > { %v459_v49 = vadd.f32 %v458_v48, %v457_v47 }
 0x21b   : > { %661 = vpush %v459_v49 }
 0x24c   : > { %s662_s23 = spop %661 }
 0x24d   : > { %v464_v52 = vstv %s662_s23 }
 0x24e   : > { %v465_v53 = vsel %vm463_vm2, %v464_v52, 0.0 }
 0x24f   : > { %466 = vst [vmem:[%s261_s13] sm:$0x1] %v465_v53 }
 0x250   : > { %863 = shalt.err (!%p860_p2)
}
 0x251   : > { %s864_s5 = scalar_lea.hbm %s1198_s30, 16  ;;  %s868_s28 = scalar_lea.hbm %s1251_s4, 32 }
 0x252   : > { %p865_p3 = scmp.ne.s32.totalorder %s1198_s30, %s864_s5  ;;  %p869_p13 = scmp.lt.u32.totalorder %s1198_s30, %s1251_s4 }
 0x253   : > { %p870_p6 = scmp.lt.u32.totalorder %s868_s28, %s864_s5  ;;  %p872_p12 = scmp.lt.u32.totalorder %s864_s5, %s1198_s30 }
 0x254   : > { %p866_p7 = pnand %p865_p3, %p1077_p10 }
 0x255   : > { %p871_p8 = por %p870_p6, %p869_p13 }
 0x256   : > { %p867_p4 = pneg %p866_p7 }
 0x257   : > { %p873_p11 = por %p872_p12, %p871_p8 }
 0x259   : > { %p874_p0 = pnand %p873_p11, %p867_p4 }
 0x25b   : > { %877 = shalt.err (!%p874_p0)
}
 0x25c   : > { %670 = dma.vmem_to_hbm [thread:$0]  (%p1077_p10), %s1200_s25, 16, %s1198_s30, %s473_s12  }
 0x25d PF: > { %s516_s0 = sand.u32 1, %s920_s17   ;;  %p1269_p5 = scmp.ne.s32.totalorder %s1259_s27, 0 }
 0x25e   : > { %p1270_p9 = scmp.ge.s32.totalorder %s940_s22, 2  ;;  %s517_s13 = scalar_lea.sflag [#allocation5], %s516_s0 }
 0x260   : > { %p682_p1 = pnand %p1270_p9, %p1269_p5 }
 0x262   : > { %911 = dma.done.wait (!%p682_p1), %s517_s13, 512  }
 0x263   : > { %913 = vsyncadd (!%p682_p1), %s517_s13, 4294966784  ;;  %s526_s23 = scalar_lea.sflag [#allocation10], %s516_s0 }
 0x264   : > { %915 = dma.done.wait (!%p682_p1), %s526_s23, 16  }
 0x265   : > { %917 = vsyncadd (!%p682_p1), %s526_s23, 4294967280  ;;  %s26_s22 = sadd.s32 1, %s940_s22   ;;  %s1271_s17 = smov %s924_s18 }
 0x266   : > { %p23_p2 = scmp.ge.s32.totalorder %s26_s22, 4   ;;  %s1272_s18 = smov %s928_s19 }
 0x267   : > { %s1273_s19 = smov %s1086_s10  ;;  %s1274_s20 = smov %s936_s21 }
 0x268   : > { %s1275_s21 = smov %s1277_s6  ;;  %25 = sbr.rel (!%p23_p2) target bundleno = 11 (0xb), region = 98 }
 0x26f   :  { %530 = vsyncpa [#allocation4], 1 }
 0x270   :  { %532 = vsyncpa [#allocation4 + $0x1], 1 }
 0x271   :  { %533 = vsyncpa [#allocation7], 1 }
 0x272   :  { %534 = vsyncpa [#allocation5], 1 }
 0x273   :  { %536 = vsyncpa [#allocation5 + $0x1], 1 }
 0x274   :  { %537 = vsyncpa [#allocation10], 1 }
 0x275   :  { %539 = vsyncpa [#allocation10 + $0x1], 1 }

</bundles_post_ra>
